<compile_context>
chip_gen: v7x
topology: tpu7x:2x2x1
jax: 0.10.0
libtpu: 0.0.40
codegen_flags: <defaults>
</compile_context>

<pallas_src>
import functools

import jax
import jax.numpy as jnp
from jax.experimental import pallas as pl
from jax.experimental.pallas import tpu as pltpu

HIDDEN = 32
SUBLANES = 8     # padded logit rows (action_size <= 8); pad bias = -1e30 => prob 0
LANES = 128      # TPU lane width; batch tiles are multiples of this


def _round_up(n, m):
    return ((n + m - 1) // m) * m


def net_kernel(xt_ref, w1t_ref, b1_ref, w2tp_ref, b2p_ref, out_ref):
    """Fused Linear -> ReLU -> Linear -> Softmax, batch on the lane axis.

    xt_ref:   (obs, bb)          one lane tile of x^T
    w1t_ref:  (HIDDEN, obs)      W1^T, VMEM-resident across grid steps
    b1_ref:   (HIDDEN, 1)
    w2tp_ref: (SUBLANES, HIDDEN) W2^T zero-padded to 8 rows
    b2p_ref:  (SUBLANES, 1)      b2, padded rows = -1e30 (=> exp()==0 exactly in f32)
    out_ref:  (SUBLANES, bb)     per-action probabilities (padded rows ~ 0)
    """
    xt = xt_ref[...]                                                      # (obs, bb)
    h = jnp.dot(w1t_ref[...], xt, preferred_element_type=jnp.float32)    # (32, bb)
    h = jnp.maximum(h + b1_ref[...], 0.0)                                 # ReLU
    logits = jnp.dot(w2tp_ref[...], h, preferred_element_type=jnp.float32)
    logits = logits + b2p_ref[...]                                        # (8, bb)
    # Numerically-stable softmax over the (8-sublane) action axis.
    m = jnp.max(logits, axis=0, keepdims=True)
    e = jnp.exp(logits - m)
    denom = jnp.sum(e, axis=0, keepdims=True)
    # Exact reciprocal: kernel is mem-bound so it's free; probs sum to 1 in f32.
    out_ref[...] = e * pl.reciprocal(denom, approx=False)


def prepare_params(w1, b1, w2, b2):
    """One-time layout prep (hoisted out of the per-call forward path).

    w1: (obs, HIDDEN)  b1: (HIDDEN,)  w2: (HIDDEN, act)  b2: (act,)
    Returns transposed / sublane-padded tensors for the lane-major kernel.
    """
    obs, hidden = w1.shape
    act = w2.shape[1]
    assert hidden == HIDDEN and act <= SUBLANES
    w1t = jnp.asarray(w1.T, jnp.float32)                               # (HIDDEN, obs)
    b1c = jnp.asarray(b1, jnp.float32).reshape(HIDDEN, 1)
    w2tp = jnp.zeros((SUBLANES, HIDDEN), jnp.float32).at[:act, :].set(w2.T)
    b2p = jnp.full((SUBLANES, 1), -1e30, jnp.float32).at[:act, :].set(
        jnp.asarray(b2, jnp.float32).reshape(act, 1))
    return w1t, b1c, w2tp, b2p


def net_forward(x, w1t, b1c, w2tp, b2p, action_size, *, block_b=2048):
    """Batched forward. x: (B, obs) float32 -> (B, action_size) probabilities."""
    B, obs = x.shape
    xt = x.T                                    # (obs, B): batch on the lane axis
    out_shape = jax.ShapeDtypeStruct((SUBLANES, B), jnp.float32)

    if B <= LANES:
        # Tiny per-env-step path: no grid, whole arrays VMEM-resident.
        out_t = pl.pallas_call(net_kernel, out_shape=out_shape)(
            xt, w1t, b1c, w2tp, b2p)
    else:
        # Lane tile: multiple of 128, capped near B/2 so the parallel batch
        # axis always yields >= 2 grid steps (keeps both v7x TensorCores busy).
        bb = max(LANES, min(block_b, _round_up(pl.cdiv(B, 2), LANES)))
        nblk = pl.cdiv(B, bb)   # partial last tile: garbage lanes are computed
                                # but masked on store / never read back
        out_t = pl.pallas_call(
            net_kernel,
            out_shape=out_shape,
            grid=(nblk,),
            in_specs=[
                pl.BlockSpec((obs, bb), lambda i: (0, i)),          # stream x^T tiles
                pl.BlockSpec((HIDDEN, obs), lambda i: (0, 0)),      # weights / biases
                pl.BlockSpec((HIDDEN, 1), lambda i: (0, 0)),        #   stay resident
                pl.BlockSpec((SUBLANES, HIDDEN), lambda i: (0, 0)),
                pl.BlockSpec((SUBLANES, 1), lambda i: (0, 0)),
            ],
            out_specs=pl.BlockSpec((SUBLANES, bb), lambda i: (0, i)),
            compiler_params=pltpu.CompilerParams(
                dimension_semantics=("parallel",)),  # megacore / 2-TC sharding
        )(xt, w1t, b1c, w2tp, b2p)

    # (8, B) -> (B, act). Padded rows carry ~0 probability and are dropped here.
    return out_t[:action_size, :].T


def init_params(key, obs_size, action_size):
    """nn.Linear-style init (uniform +/- 1/sqrt(fan_in)); weights stored [in, out]."""
    k1, k2, k3, k4 = jax.random.split(key, 4)
    bound1 = 1.0 / jnp.sqrt(obs_size)
    bound2 = 1.0 / jnp.sqrt(HIDDEN)
    w1 = jax.random.uniform(k1, (obs_size, HIDDEN), jnp.float32, -bound1, bound1)
    b1 = jax.random.uniform(k2, (HIDDEN,), jnp.float32, -bound1, bound1)
    w2 = jax.random.uniform(k3, (HIDDEN, action_size), jnp.float32, -bound2, bound2)
    b2 = jax.random.uniform(k4, (action_size,), jnp.float32, -bound2, bound2)
    return w1, b1, w2, b2


def reference_forward(x, w1, b1, w2, b2):
    h = jnp.maximum(x @ w1 + b1, 0.0)
    return jax.nn.softmax(h @ w2 + b2, axis=1)


if __name__ == "__main__":
    obs_size, action_size = 4, 2   # CartPole-v1 sizes
    key = jax.random.PRNGKey(0)
    kx1, kx2, kx3, kp = jax.random.split(key, 4)
    w1, b1, w2, b2 = init_params(kp, obs_size, action_size)
    padded = prepare_params(w1, b1, w2, b2)   # hoisted: once per parameter update

    fwd = jax.jit(functools.partial(net_forward, action_size=action_size,
                                    block_b=2048))

    # (1) ES-eval batch: grid path with >= 2 parallel lane tiles.
    xb = jax.random.normal(kx1, (512, obs_size), jnp.float32)
    outb = jax.block_until_ready(fwd(xb, *padded))
    refb = reference_forward(xb, w1, b1, w2, b2)
    assert outb.shape == (512, action_size)
    assert jnp.allclose(outb, refb, atol=1e-4, rtol=1e-4)
    assert jnp.allclose(jnp.sum(outb, axis=1), 1.0, atol=1e-5)

    # (2) Odd-sized batch: exercises the partial (masked) last lane tile.
    xo = jax.random.normal(kx3, (300, obs_size), jnp.float32)
    outo = jax.block_until_ready(fwd(xo, *padded))
    refo = reference_forward(xo, w1, b1, w2, b2)
    assert outo.shape == (300, action_size)
    assert jnp.allclose(outo, refo, atol=1e-4, rtol=1e-4)
    assert jnp.allclose(jnp.sum(outo, axis=1), 1.0, atol=1e-5)

    # (3) Tiny single-shot path (per-env-step action selection): no grid.
    xs = jax.random.normal(kx2, (8, obs_size), jnp.float32)
    outs = jax.block_until_ready(fwd(xs, *padded))
    refs_ = reference_forward(xs, w1, b1, w2, b2)
    assert outs.shape == (8, action_size)
    assert jnp.allclose(outs, refs_, atol=1e-4, rtol=1e-4)
    assert jnp.allclose(jnp.sum(outs, axis=1), 1.0, atol=1e-5)

    print("KERNEL_OK")
</pallas_src>

<mosaic_0001>
module attributes {stable_mosaic.version = 11 : i64} {
  func.func @net_kernel(%arg0: i32, %arg1: memref<4x256xf32, #tpu.memory_space<vmem>>, %arg2: memref<32x4xf32, #tpu.memory_space<vmem>>, %arg3: memref<32x1xf32, #tpu.memory_space<vmem>>, %arg4: memref<8x32xf32, #tpu.memory_space<vmem>>, %arg5: memref<8x1xf32, #tpu.memory_space<vmem>>, %arg6: memref<8x256xf32, #tpu.memory_space<vmem>>) attributes {dimension_semantics = [#tpu.dimension_semantics<parallel>], iteration_bounds = array<i64: 2>, scalar_prefetch = 0 : i64, scratch_operands = 0 : i64, tpu.core_type = #tpu.core_type<tc>, window_params = [{transform_indices = @transform_0, window_bounds = array<i64: 4, 256>}, {pipeline_mode = #tpu.pipeline_mode<synchronous>, transform_indices = @transform_1, window_bounds = array<i64: 32, 4>}, {pipeline_mode = #tpu.pipeline_mode<synchronous>, transform_indices = @transform_2, window_bounds = array<i64: 32, 1>}, {pipeline_mode = #tpu.pipeline_mode<synchronous>, transform_indices = @transform_3, window_bounds = array<i64: 8, 32>}, {pipeline_mode = #tpu.pipeline_mode<synchronous>, transform_indices = @transform_4, window_bounds = array<i64: 8, 1>}, {transform_indices = @transform_5, window_bounds = array<i64: 8, 256>}]} {
    %c0 = arith.constant 0 : index
    %c0_0 = arith.constant 0 : index
    %0 = vector.load %arg1[%c0, %c0_0] : memref<4x256xf32, #tpu.memory_space<vmem>>, vector<4x256xf32>
    %c0_1 = arith.constant 0 : index
    %c0_2 = arith.constant 0 : index
    %1 = vector.load %arg2[%c0_1, %c0_2] : memref<32x4xf32, #tpu.memory_space<vmem>>, vector<32x4xf32>
    %cst = arith.constant dense<0.000000e+00> : vector<32x256xf32>
    %2 = tpu.matmul %1, %0, %cst {dimension_numbers = #tpu.dot_dimension_numbers<[1], [0], [0], [1], [0, 0, 1, 1], [], []>} : vector<32x4xf32>, vector<4x256xf32>, vector<32x256xf32> -> vector<32x256xf32>
    %c0_3 = arith.constant 0 : index
    %c0_4 = arith.constant 0 : index
    %3 = vector.load %arg3[%c0_3, %c0_4] : memref<32x1xf32, #tpu.memory_space<vmem>>, vector<32x1xf32>
    %4 = vector.broadcast %3 : vector<32x1xf32> to vector<32x256xf32>
    %5 = arith.addf %2, %4 : vector<32x256xf32>
    %cst_5 = arith.constant 0.000000e+00 : f32
    %6 = vector.broadcast %cst_5 : f32 to vector<32x256xf32>
    %7 = arith.maximumf %5, %6 : vector<32x256xf32>
    %c0_6 = arith.constant 0 : index
    %c0_7 = arith.constant 0 : index
    %8 = vector.load %arg4[%c0_6, %c0_7] : memref<8x32xf32, #tpu.memory_space<vmem>>, vector<8x32xf32>
    %cst_8 = arith.constant dense<0.000000e+00> : vector<8x256xf32>
    %9 = tpu.matmul %8, %7, %cst_8 {dimension_numbers = #tpu.dot_dimension_numbers<[1], [0], [0], [1], [0, 0, 1, 1], [], []>} : vector<8x32xf32>, vector<32x256xf32>, vector<8x256xf32> -> vector<8x256xf32>
    %c0_9 = arith.constant 0 : index
    %c0_10 = arith.constant 0 : index
    %10 = vector.load %arg5[%c0_9, %c0_10] : memref<8x1xf32, #tpu.memory_space<vmem>>, vector<8x1xf32>
    %11 = vector.broadcast %10 : vector<8x1xf32> to vector<8x256xf32>
    %12 = arith.addf %9, %11 : vector<8x256xf32>
    %cst_11 = arith.constant dense<0xFF800000> : vector<256xf32>
    %13 = vector.multi_reduction <maximumf>, %12, %cst_11 [0] : vector<8x256xf32> to vector<256xf32>
    %14 = vector.shape_cast %13 : vector<256xf32> to vector<1x256xf32>
    %15 = vector.broadcast %14 : vector<1x256xf32> to vector<8x256xf32>
    %16 = arith.subf %12, %15 : vector<8x256xf32>
    %17 = math.exp %16 : vector<8x256xf32>
    %cst_12 = arith.constant dense<0.000000e+00> : vector<256xf32>
    %18 = vector.multi_reduction <add>, %17, %cst_12 [0] : vector<8x256xf32> to vector<256xf32>
    %19 = vector.shape_cast %18 : vector<256xf32> to vector<1x256xf32>
    %20 = tpu.reciprocal %19 : vector<1x256xf32> -> vector<1x256xf32>
    %21 = vector.broadcast %20 : vector<1x256xf32> to vector<8x256xf32>
    %22 = arith.mulf %17, %21 : vector<8x256xf32>
    %c0_13 = arith.constant 0 : index
    %c0_14 = arith.constant 0 : index
    %23 = vector.load %arg6[%c0_13, %c0_14] : memref<8x256xf32, #tpu.memory_space<vmem>>, vector<8x256xf32>
    tpu.vector_store %arg6[%c0_13, %c0_14], %22 {strides = array<i32>} : memref<8x256xf32, #tpu.memory_space<vmem>>, vector<8x256xf32>,
    return
  }
  func.func @transform_0(%arg0: i32) -> (i32, i32) {
    %c0_i32 = arith.constant 0 : i32
    %c0_i32_0 = arith.constant 0 : i32
    return %c0_i32, %arg0 : i32, i32
  }
  func.func @transform_1(%arg0: i32) -> (i32, i32) {
    %c0_i32 = arith.constant 0 : i32
    %c0_i32_0 = arith.constant 0 : i32
    %c0_i32_1 = arith.constant 0 : i32
    return %c0_i32, %c0_i32_0 : i32, i32
  }
  func.func @transform_2(%arg0: i32) -> (i32, i32) {
    %c0_i32 = arith.constant 0 : i32
    %c0_i32_0 = arith.constant 0 : i32
    %c0_i32_1 = arith.constant 0 : i32
    return %c0_i32, %c0_i32_0 : i32, i32
  }
  func.func @transform_3(%arg0: i32) -> (i32, i32) {
    %c0_i32 = arith.constant 0 : i32
    %c0_i32_0 = arith.constant 0 : i32
    %c0_i32_1 = arith.constant 0 : i32
    return %c0_i32, %c0_i32_0 : i32, i32
  }
  func.func @transform_4(%arg0: i32) -> (i32, i32) {
    %c0_i32 = arith.constant 0 : i32
    %c0_i32_0 = arith.constant 0 : i32
    %c0_i32_1 = arith.constant 0 : i32
    return %c0_i32, %c0_i32_0 : i32, i32
  }
  func.func @transform_5(%arg0: i32) -> (i32, i32) {
    %c0_i32 = arith.constant 0 : i32
    %c0_i32_0 = arith.constant 0 : i32
    return %c0_i32, %arg0 : i32, i32
  }
}

</mosaic_0001>

<bundles_post_ra>
// kernel: net_forward.1
= control target key start
LH: loop header
LB: loop body
LE: loop exit
PB: predicated region body
PF: predicated region fallthrough
CT: control target
= control target key end

     0   :  { %s635_s18 = smov 0   ;;  %s686_s0 = inlined_call_operand.vmem [shape: f32[4,512], index: 0, kind: input, shape index: {}]   ;;  %s687_s1 = inlined_call_operand.vmem [shape: f32[32,4], index: 1, kind: input, shape index: {}]   ;;  %s688_s2 = inlined_call_operand.vmem [shape: f32[32,1], index: 2, kind: input, shape index: {}]   ;;  %s689_s3 = inlined_call_operand.vmem [shape: f32[8,32], index: 3, kind: input, shape index: {}]   ;;  %s690_s4 = inlined_call_operand.vmem [shape: f32[8,1], index: 4, kind: input, shape index: {}]   ;;  %s691_s5 = inlined_call_operand.vmem [shape: f32[8,512], index: 5, kind: output, shape index: {}]  }
   0x1 LB: > { %s548_s19 = sadd.s32 4294967295, %s601_s18   ;;  %p552_p0 = scmp.ge.s32.totalorder %s601_s18, 1  ;;  %s601_s18 = sphi %s635_s18, %s15_s18  }
   0x2   : > { %p188_p1 = scmp.lt.s32.totalorder %s601_s18, 3 }
   0x4   : > { %p189_p2 = pnand %p552_p0, %p188_p1 }
   0x5   : > { %s553_s20 = sshll.u32 (!%p189_p2), %s548_s19, 1  ;;  %v603_v0 = vmov (!%p189_p2), 0.0   ;;  %v233_v1 = vld [vmem:[%s688_s2] sm:$0xff] (!%p189_p2)  ;;  %v604_v2 = vmov (!%p189_p2), 0   ;;  %v235_v3 = vld [vmem:[%s688_s2 + $0x10] sm:$0xff] (!%p189_p2)  ;;  %v234_v4 = vld [vmem:[%s688_s2 + $0x8] sm:$0xff] (!%p189_p2) }
   0x6   : > { %192 = sbr.rel (%p189_p2) target bundleno = 524 (0x20c), region = 40  ;;  %p217_p3 = scmp.lt.s32.totalorder (!%p189_p2), %s553_s20, 3  ;;  %341 = vmatprep.mubr.f32.mxu0 (!%p189_p2), %v603_v0  ;;  %449 = vmatprep.mubr.f32.mxu1 (!%p189_p2), %v603_v0  ;;  %v236_v5 = vld [vmem:[%s688_s2 + $0x18] sm:$0xff] (!%p189_p2)  ;;  %vm272_vm0 = vcmask (!%p189_p2), 1043456   ;;  %v375_v8 = vld [vmem:[%s690_s4] sm:$0xff] (!%p189_p2)  ;;  %vm259_vm1 = vcmask (!%p189_p2), 31744  }
   0x7   : > { %584 = vset.pattern.permute.xlu0 (!%p189_p2), %v604_v2  ;;  %585 = vset.pattern.permute.xlu1 (!%p189_p2), %v604_v2  ;;  %v229_v9 = vld [vmem:[%s687_s1] sm:$0xff] (!%p189_p2)  ;;  %v230_v10 = vld [vmem:[%s687_s1 + $0x8] sm:$0xff] (!%p189_p2)  ;;  %v231_v11 = vld [vmem:[%s687_s1 + $0x10] sm:$0xff] (!%p189_p2)  ;;  %vm381_vm2 = vcmask (!%p189_p2), 261120  }
   0x8   : > { %239 = vperm.xlu0 (!%p189_p2), %584, %v233_v1   ;;  %249 = vperm.xlu1 (!%p189_p2), %585, %v235_v3   ;;  %v232_v12 = vld [vmem:[%s687_s1 + $0x18] sm:$0xff] (!%p189_p2)  ;;  %v374_v45 = vld [vmem:[%s689_s3] sm:$0xff] (!%p189_p2) }
   0xc   : > { %244 = vperm.xlu0 (!%p189_p2), %584, %v234_v4   ;;  %254 = vperm.xlu1 (!%p189_p2), %585, %v236_v5  }
   0xd   : > { %s693_s20 = smov (!%p217_p3, %s553_s20), 3 }
   0xe   : > { %s554_s29 = sshll.u32 %s693_s20, 2  ;;  %s556_s22 = sshll.u32 %s693_s20, 3 }
   0xf   : > { %s220_s7 = scalar_lea.vmem %s686_s0, %s554_s29  ;;  %s226_s25 = scalar_lea.vmem %s691_s5, %s556_s22 }
  0x10   : > { %v228_v6 = vld [vmem:[%s220_s7] sm:$0xff]  ;;  %378 = vperm.xlu0 %584, %v375_v8  }
  0x11   : > { %v258_v7 = vcombine.high %v228_v6, %v228_v6 }
  0x13   : > { %557 = vmatprep.subr.msk.mxu0 %vm272_vm0, %v258_v7 }
  0x14   : > { %558 = vmatpush1.msk.msra.mxu0 %vm272_vm0, %v228_v6 }
  0x15   : > { %559 = vmatmul.mubr.msk.f32.vlgmr.msra.gmra.mrb[0].mxu0 %vm259_vm1, %v229_v9 }
  0x16   : > { %347 = vmatprep.mubr.f32.mxu0 %v603_v0 }
  0x19   : > { %560 = vmatmul.mubr.msk.f32.gmra.mrb[2].mxu0 %vm259_vm1, %v230_v10 }
  0x1a   : > { %353 = vmatprep.mubr.f32.mxu0 %v603_v0 }
  0x1d   : > { %561 = vmatmul.mubr.msk.f32.gmra.mrb[4].mxu0 %vm259_vm1, %v231_v11 }
  0x1e   : > { %359 = vmatprep.mubr.f32.mxu0 %v603_v0 }
  0x21   : > { %562 = vmatmul.mubr.msk.f32.gmra.mrb[6].mxu0 %vm259_vm1, %v232_v12 }
  0x87   : > { %v240_v13 = vpop.permute.xlu0 %239  ;;  %v250_v22 = vpop.permute.xlu1 %249 }
  0x8b   : > { %v245_v17 = vpop.permute.xlu0 %244  ;;  %v255_v33 = vpop.permute.xlu1 %254 }
  0x8f   : > { %v379_v46 = vpop.permute.xlu0 %378 }
  0xe8   : > { %v343_v14 = vpop.f32.mrb[0].mxu0 }
  0xe9   : > { %v345_v15 = vpop.f32.mrb[1].mxu0  ;;  %v344_v16 = vadd.f32 %v343_v14, %v240_v13 }
  0xea   : > { %v346_v18 = vadd.f32 %v345_v15, %v240_v13 }
  0xeb   : > { %v366_v24 = vmax.f32 %v344_v16, 0.0 }
  0xec   : > { %v349_v19 = vpop.f32.mrb[2].mxu0  ;;  %v367_v26 = vmax.f32 %v346_v18, 0.0 }
  0xed   : > { %v350_v20 = vadd.f32 %v349_v19, %v245_v17  ;;  %v351_v21 = vpop.f32.mrb[3].mxu0 }
  0xee   : > { %v352_v23 = vadd.f32 %v351_v21, %v245_v17 }
  0xef   : > { %v368_v25 = vmax.f32 %v350_v20, 0.0 }
  0xf0   : > { %v369_v27 = vmax.f32 %v352_v23, 0.0  ;;  %v355_v28 = vpop.f32.mrb[4].mxu0 }
  0xf1   : > { %v357_v29 = vpop.f32.mrb[5].mxu0  ;;  %v568_v30 = vpack.c.bf16 %v368_v25, %v366_v24  ;;  %v356_v32 = vadd.f32 %v355_v28, %v250_v22 }
  0xf2   : > { %v566_v31 = vpack.c.bf16 %v369_v27, %v367_v26  ;;  %v358_v34 = vadd.f32 %v357_v29, %v250_v22 }
  0xf3   : > { %v370_v39 = vmax.f32 %v356_v32, 0.0 }
  0xf4   : > { %v361_v35 = vpop.f32.mrb[6].mxu0  ;;  %567 = vmatprep.subr.bf16.mxu1 %v566_v31  ;;  %v371_v41 = vmax.f32 %v358_v34, 0.0 }
  0xf5   : > { %v362_v36 = vadd.f32 %v361_v35, %v255_v33  ;;  %v363_v37 = vpop.f32.mrb[7].mxu0  ;;  %569 = vmatpush1.bf16.msra.mxu1 %v568_v30 }
  0xf6   : > { %v364_v38 = vadd.f32 %v363_v37, %v255_v33 }
  0xf7   : > { %v372_v40 = vmax.f32 %v362_v36, 0.0 }
  0xf8   : > { %v373_v42 = vmax.f32 %v364_v38, 0.0 }
  0xf9   : > { %v572_v43 = vpack.c.bf16 %v372_v40, %v370_v39 }
  0xfa   : > { %v570_v44 = vpack.c.bf16 %v373_v42, %v371_v41 }
  0xfc   : > { %571 = vmatprep.subr.bf16.mxu1 %v570_v44 }
  0xfd   : > { %573 = vmatpush1.bf16.msra.mxu1 %v572_v43 }
 0x100   : > { %563 = vmatmul.mubr.msk.f32.vlgmr.msra.gmra.mrb[0].mxu1 %vm381_vm2, %v374_v45 }
 0x1d3   : > { %v451_v47 = vpop.f32.mrb[0].mxu1 }
 0x1d4   : > { %v452_v48 = vadd.f32 %v451_v47, %v379_v46  ;;  %v453_v49 = vpop.f32.mrb[1].mxu1 }
 0x1d5   : > { %v454_v50 = vadd.f32 %v453_v49, %v379_v46 }
 0x1d6   : > { %v456_v51 = vrot.slane %v452_v48, 4 }
 0x1d7   : > { %v462_v52 = vrot.slane %v454_v50, 4 }
 0x1d8   : > { %v457_v53 = vmax.f32 %v452_v48, %v456_v51 }
 0x1d9   : > { %v463_v54 = vmax.f32 %v454_v50, %v462_v52 }
 0x1da   : > { %v458_v55 = vrot.slane %v457_v53, 2 }
 0x1db   : > { %v464_v56 = vrot.slane %v463_v54, 2 }
 0x1dc   : > { %v459_v57 = vmax.f32 %v457_v53, %v458_v55 }
 0x1dd   : > { %v465_v58 = vmax.f32 %v463_v54, %v464_v56 }
 0x1de   : > { %v460_v59 = vrot.slane %v459_v57, 1 }
 0x1df   : > { %v466_v60 = vrot.slane %v465_v58, 1 }
 0x1e0   : > { %v461_v61 = vmax.f32 %v459_v57, %v460_v59 }
 0x1e1   : > { %v467_v62 = vmax.f32 %v465_v58, %v466_v60 }
 0x1e2   : > { %v468_v63 = vsub.f32 %v452_v48, %v461_v61 }
 0x1e3   : > { %v469_v0 = vsub.f32 %v454_v50, %v467_v62 }
 0x1e4   : > { %v470_v1 = vmul.f32 1.442695, %v468_v63 }
 0x1e5   : > { %v472_v2 = vmul.f32 1.442695, %v469_v0 }
 0x1e6   : > { %587 = vpow2.f32 %v470_v1 }
 0x1e7   : > { %589 = vpow2.f32 %v472_v2 }
 0x1f0   : > { %v588_v3 = vpop.eup %587 }
 0x1f1   : > { %v590_v4 = vpop.eup %589  ;;  %v474_v5 = vrot.slane %v588_v3, 4 }
 0x1f2   : > { %v480_v6 = vrot.slane %v590_v4, 4 }
 0x1f3   : > { %v475_v7 = vadd.f32 %v588_v3, %v474_v5 }
 0x1f4   : > { %v481_v8 = vadd.f32 %v590_v4, %v480_v6 }
 0x1f5   : > { %v476_v9 = vrot.slane %v475_v7, 2 }
 0x1f6   : > { %v482_v10 = vrot.slane %v481_v8, 2 }
 0x1f7   : > { %v477_v11 = vadd.f32 %v476_v9, %v475_v7 }
 0x1f8   : > { %v483_v12 = vadd.f32 %v482_v10, %v481_v8 }
 0x1f9   : > { %v478_v13 = vrot.slane %v477_v11, 1 }
 0x1fa   : > { %v484_v14 = vrot.slane %v483_v12, 1 }
 0x1fb   : > { %v479_v15 = vadd.f32 %v478_v13, %v477_v11 }
 0x1fc   : > { %v485_v16 = vadd.f32 %v484_v14, %v483_v12 }
 0x1fd   : > { %591 = vrcp.f32 %v479_v15 }
 0x1fe   : > { %593 = vrcp.f32 %v485_v16 }
 0x207   : > { %v592_v17 = vpop.eup %591 }
 0x208   : > { %v594_v18 = vpop.eup %593  ;;  %v488_v19 = vmul.f32 %v592_v17, %v588_v3 }
 0x209   : > { %v489_v20 = vmul.f32 %v594_v18, %v590_v4 }
 0x20a   : > { %490 = vst [vmem:[%s226_s25] sm:$0xff] %v488_v19 }
 0x20b   : > { %491 = vst [vmem:[%s226_s25 + $0x8] sm:$0xff] %v489_v20 }
 0x20c PF: > { %s15_s18 = sadd.s32 1, %s601_s18  }
 0x20d   : > { %p12_p4 = scmp.ge.s32.totalorder %s15_s18, 4  }
 0x20f   :  { %14 = sbr.rel (!%p12_p4) target bundleno = 1 (0x1), region = 70 }

</bundles_post_ra>
